<compile_context>
chip_gen: v6e
topology: v6e:2x2x1
jax: 0.10.0
libtpu: 0.0.40
codegen_flags: <defaults>
</compile_context>

<pallas_src>
import functools

import numpy as np
import jax
import jax.numpy as jnp
from jax.experimental import pallas as pl
from jax.experimental.pallas import tpu as pltpu

EPS = 1e-5  # PyTorch BatchNorm default eps


def transition_kernel(x_ref, scale_ref, shift_ref, w_ref, p_ref, mem_ref, params_ref,
                      out_ref, new_mem_ref, *, dense_pool):
    # x_ref:    (Cin,  tile_hw)   one batch element / HW tile, channel-major
    # mem_ref:  (Cout, tile_hw)
    # w_ref:    (Cout, Cin)       1x1 conv weight (bf16)
    # p_ref:    dense: (tile_hw, tile_hw//4)   row-pair: (2W, W//2)   fp32 pool matrix
    # params:   SMEM [threshold, 1/threshold, leak]
    x = x_ref[...].astype(jnp.float32)

    # --- SeparatedBatchNorm1d folded to per-channel scale/shift (eval-mode stats,
    #     timestep-t statistics selected in the wrapper) ---
    bn = x * scale_ref[...] + shift_ref[...]

    # --- act_func: spiking heaviside forward; {0,1} is exact in bf16 ---
    # TODO(synk): act_func is a runtime argument in PyTorch; hardcoded to the spike
    # function here (surrogate-gradient backward not implemented - forward only).
    spike = (bn > 0.0).astype(w_ref.dtype)

    # --- 1x1 conv (no bias) == channel matmul on the MXU, bf16 inputs, f32 accum ---
    conv = jnp.dot(w_ref[...], spike, preferred_element_type=jnp.float32)  # (Cout, thw)

    thr = params_ref[0]
    inv_thr = params_ref[1]
    leak = params_ref[2]

    mem = mem_ref[...].astype(jnp.float32)
    mem_thr = mem * inv_thr - 1.0
    rst = jnp.where(mem_thr > 0.0, thr, 0.0)
    new_mem_ref[...] = (leak * mem + conv - rst).astype(new_mem_ref.dtype)  # lane-dense

    # --- F.avg_pool2d(mem_thr, 2) as a single MXU matmul (pool reads the PRE-update
    #     membrane, i.e. mem_thr, matching the PyTorch ordering) ---
    cout, tile_hw = mem_ref.shape
    if dense_pool:
        # (Cout, tile_hw) @ (tile_hw, tile_hw/4): no relayouts, lane-dense result.
        pooled = jnp.dot(mem_thr, p_ref[...], preferred_element_type=jnp.float32)
    else:
        # Row-major reinterpretation: rows 2k,2k+1 of each image occupy one contiguous
        # 2W-lane slab, so (Cout, tile_hw) == (Cout*rows/2, 2W) bit-for-bit.
        two_w, wo = p_ref.shape
        n_pairs = tile_hw // two_w
        pooled = jnp.dot(mem_thr.reshape(cout * n_pairs, two_w), p_ref[...],
                         preferred_element_type=jnp.float32)
        pooled = pooled.reshape(cout, n_pairs * wo)
    out_ref[...] = pooled.astype(out_ref.dtype)  # single full-width store


def _build_pool_matrix(rows, W):
    """(rows*W, (rows//2)*(W//2)) matrix P: flattened `rows` image rows @ P gives the
    2x2-average-pooled flattened output rows. Translation-invariant across row-pair
    groups, so the same matrix serves every HW tile."""
    Wo = W // 2
    p = np.zeros((rows * W, (rows // 2) * Wo), np.float32)
    for h in range(rows):
        for w in range(W):
            p[h * W + w, (h // 2) * Wo + w // 2] = 0.25
    return jnp.asarray(p)


def transition_forward(x_nchw, mem_nchw, gamma, beta, run_mean, run_var,
                       conv_w, threshold, leak, *,
                       rows_per_tile=None, dense_pool=None, conv_dtype=jnp.bfloat16):
    """x_nchw: (B, Cin, H, W); mem_nchw: (B, Cout, H, W); conv_w: (Cout, Cin, 1, 1).
    Returns (out (B, Cout, H/2, W/2), new_mem (B, Cout, H, W)).

    rows_per_tile: image rows per HW tile (None = whole image per grid step).
    dense_pool:    force dense / row-pair pooling (None = auto: dense if tile_hw<=2048).
    """
    B, Cin, H, W = x_nchw.shape
    Cout = conv_w.shape[0]
    assert H % 2 == 0 and W % 2 == 0, "avg_pool2d(2) requires even spatial dims"
    HW, Ho, Wo = H * W, H // 2, W // 2
    HWp = Ho * Wo

    if rows_per_tile is None:
        rows_per_tile = H
    assert rows_per_tile % 2 == 0 and H % rows_per_tile == 0
    tile_hw = rows_per_tile * W
    tile_hwp = tile_hw // 4
    n_tiles = H // rows_per_tile
    if n_tiles > 1:
        # non-full blocks must keep the lane (last) dim 128-aligned
        assert tile_hw % 128 == 0 and tile_hwp % 128 == 0, \
            "choose rows_per_tile so tile_hw is a multiple of 512 (or use full image)"

    if dense_pool is None:
        dense_pool = tile_hw <= 2048  # fp32 dense pool matrix <= 4 MiB

    # channel-major flattening: pure reshapes (free), native dtype straight to the DMA
    x = x_nchw.reshape(B, Cin, HW)
    mem = mem_nchw.reshape(B, Cout, HW)
    w = conv_w.reshape(Cout, Cin).astype(conv_dtype)

    # fold BN into per-channel scale/shift (eval-mode running statistics)
    scale = gamma.astype(jnp.float32) / jnp.sqrt(run_var.astype(jnp.float32) + EPS)
    shift = beta.astype(jnp.float32) - run_mean.astype(jnp.float32) * scale
    scale = scale.reshape(Cin, 1)
    shift = shift.reshape(Cin, 1)

    pool = _build_pool_matrix(rows_per_tile if dense_pool else 2, W)

    thr = jnp.asarray(threshold, jnp.float32)
    lk = jnp.asarray(leak, jnp.float32)
    params = jnp.stack([thr, 1.0 / thr, lk]).astype(jnp.float32)  # SMEM scalars

    # advisory cost estimate (memory-bound kernel: let XLA overlap it)
    def _bytes(a):
        return int(np.prod(a.shape)) * a.dtype.itemsize
    conv_flops = 2 * B * Cout * Cin * HW
    pool_k = tile_hw if dense_pool else 2 * W
    pool_flops = 2 * B * Cout * HWp * pool_k
    bytes_accessed = (_bytes(x) + 2 * _bytes(mem) + B * Cout * HWp * mem.dtype.itemsize
                      + _bytes(w) + _bytes(scale) + _bytes(shift) + _bytes(pool)
                      + _bytes(params))
    cost = pl.CostEstimate(flops=conv_flops + pool_flops, transcendentals=0,
                           bytes_accessed=bytes_accessed)

    out_pooled, new_mem = pl.pallas_call(
        functools.partial(transition_kernel, dense_pool=dense_pool),
        grid=(B, n_tiles),
        in_specs=[
            pl.BlockSpec((None, Cin, tile_hw), lambda b, s: (b, 0, s)),    # x
            pl.BlockSpec((Cin, 1), lambda b, s: (0, 0)),                   # BN scale
            pl.BlockSpec((Cin, 1), lambda b, s: (0, 0)),                   # BN shift
            pl.BlockSpec((Cout, Cin), lambda b, s: (0, 0)),                # conv weight
            pl.BlockSpec(pool.shape, lambda b, s: (0, 0)),                 # pool matrix
            pl.BlockSpec((None, Cout, tile_hw), lambda b, s: (b, 0, s)),   # mem
            pl.BlockSpec(memory_space=pltpu.MemorySpace.SMEM),             # [thr,1/thr,leak]
        ],
        out_specs=[
            pl.BlockSpec((None, Cout, tile_hwp), lambda b, s: (b, 0, s)),  # pooled mem_thr
            pl.BlockSpec((None, Cout, tile_hw), lambda b, s: (b, 0, s)),   # updated mem
        ],
        out_shape=[
            jax.ShapeDtypeStruct((B, Cout, HWp), mem.dtype),
            jax.ShapeDtypeStruct((B, Cout, HW), mem.dtype),
        ],
        input_output_aliases={5: 1},   # mem buffer reused for new_mem (in-place update)
        compiler_params=pltpu.CompilerParams(
            dimension_semantics=("parallel", "parallel"),
            vmem_limit_bytes=48 * 1024 * 1024),
        cost_estimate=cost,
    )(x, scale, shift, w, pool, mem, params)

    # free reshapes back to NCHW
    return (out_pooled.reshape(B, Cout, Ho, Wo),
            new_mem.reshape(B, Cout, H, W))


transition_forward = jax.jit(
    transition_forward, static_argnames=("rows_per_tile", "dense_pool", "conv_dtype"))


def transition_reference(x, mem, gamma, beta, mean, var, w_oc, thr, leak):
    """Pure-JAX reference mirroring the PyTorch forward (NCHW, fp32)."""
    g = gamma[None, :, None, None]
    b = beta[None, :, None, None]
    m = mean[None, :, None, None]
    v = var[None, :, None, None]
    bn = (x - m) / jnp.sqrt(v + EPS) * g + b
    spike = (bn > 0.0).astype(jnp.float32)
    w = w_oc.reshape(w_oc.shape[0], w_oc.shape[1])
    conv = jnp.einsum('oi,bihw->bohw', w, spike)
    mem_thr = mem / thr - 1.0
    rst = thr * (mem_thr > 0.0).astype(jnp.float32)
    new_mem = leak * mem + conv - rst
    B, Cout, H, W = mem.shape
    out = mem_thr.reshape(B, Cout, H // 2, 2, W // 2, 2).mean(axis=(3, 5))
    return out, new_mem


def _run_case(key, B, Cin, Cout, H, W, T, t, threshold, leak, **kw):
    ks = jax.random.split(key, 7)
    x = jax.random.normal(ks[0], (B, Cin, H, W), jnp.float32)            # out_prev
    mem = jax.random.normal(ks[1], (B, Cout, H, W), jnp.float32)         # mem[pos]

    # SeparatedBatchNorm1d parameters (shared affine, per-timestep running stats)
    gamma = 1.0 + 0.1 * jax.random.normal(ks[2], (Cin,), jnp.float32)
    beta = 0.1 * jax.random.normal(ks[3], (Cin,), jnp.float32)
    run_mean = 0.1 * jax.random.normal(ks[4], (T, Cin), jnp.float32)
    run_var = 1.0 + 0.1 * jax.random.uniform(ks[5], (T, Cin), jnp.float32)

    # Conv2d(in_planes, out_planes, kernel_size=1, bias=False) weight
    conv_w = jax.random.normal(ks[6], (Cout, Cin, 1, 1), jnp.float32) / np.sqrt(Cin)

    rm, rv = run_mean[t], run_var[t]   # select timestep-t statistics (glue)

    # Reference uses the bf16-rounded conv weight (kernel runs the 1x1 conv in bf16
    # with f32 accumulation); everything else stays fp32.
    w_ref = conv_w.astype(jnp.bfloat16).astype(jnp.float32)
    ref_out, ref_mem = transition_reference(x, mem, gamma, beta, rm, rv, w_ref,
                                            threshold, leak)

    out, new_mem = transition_forward(x, mem, gamma, beta, rm, rv, conv_w,
                                      threshold, leak, **kw)
    out = jax.block_until_ready(out)
    new_mem = jax.block_until_ready(new_mem)

    assert out.shape == (B, Cout, H // 2, W // 2), out.shape
    assert new_mem.shape == (B, Cout, H, W), new_mem.shape
    np.testing.assert_allclose(np.asarray(out), np.asarray(ref_out),
                               rtol=1e-4, atol=1e-5)
    np.testing.assert_allclose(np.asarray(new_mem), np.asarray(ref_mem),
                               rtol=1e-4, atol=1e-4)


if __name__ == "__main__":
    key = jax.random.PRNGKey(0)
    k1, k2 = jax.random.split(key)

    # 1) small DenseNet-transition shape: single HW tile, dense single-matmul pool
    _run_case(k1, B=2, Cin=4, Cout=8, H=16, W=16, T=5, t=2, threshold=0.75, leak=0.9)

    # 2) larger spatial shape exercising the HW-tiled 2-D grid (128-lane aligned tiles)
    #    and the row-pair single-matmul pooling path
    _run_case(k2, B=1, Cin=8, Cout=16, H=64, W=64, T=3, t=1, threshold=1.0, leak=0.8,
              rows_per_tile=8, dense_pool=False)

    print("KERNEL_OK")
</pallas_src>

<mosaic_0001>
module attributes {stable_mosaic.version = 11 : i64} {
  func.func @transition_kernel(%arg0: i32, %arg1: i32, %arg2: memref<1x4x256xf32, #tpu.memory_space<vmem>>, %arg3: memref<4x1xf32, #tpu.memory_space<vmem>>, %arg4: memref<4x1xf32, #tpu.memory_space<vmem>>, %arg5: memref<8x4xbf16, #tpu.memory_space<vmem>>, %arg6: memref<256x64xf32, #tpu.memory_space<vmem>>, %arg7: memref<1x8x256xf32, #tpu.memory_space<vmem>>, %arg8: memref<3xf32, #tpu.memory_space<smem>>, %arg9: memref<1x8x64xf32, #tpu.memory_space<vmem>>, %arg10: memref<1x8x256xf32, #tpu.memory_space<vmem>>) attributes {dimension_semantics = [#tpu.dimension_semantics<parallel>, #tpu.dimension_semantics<parallel>], iteration_bounds = array<i64: 2, 1>, scalar_prefetch = 0 : i64, scratch_operands = 0 : i64, tpu.core_type = #tpu.core_type<tc>, window_params = [{transform_indices = @transform_0, window_bounds = array<i64: 1, 4, 256>}, {pipeline_mode = #tpu.pipeline_mode<synchronous>, transform_indices = @transform_1, window_bounds = array<i64: 4, 1>}, {pipeline_mode = #tpu.pipeline_mode<synchronous>, transform_indices = @transform_2, window_bounds = array<i64: 4, 1>}, {pipeline_mode = #tpu.pipeline_mode<synchronous>, transform_indices = @transform_3, window_bounds = array<i64: 8, 4>}, {pipeline_mode = #tpu.pipeline_mode<synchronous>, transform_indices = @transform_4, window_bounds = array<i64: 256, 64>}, {transform_indices = @transform_5, window_bounds = array<i64: 1, 8, 256>}, {transform_indices = @transform_6, window_bounds = array<i64: 3>}, {transform_indices = @transform_7, window_bounds = array<i64: 1, 8, 64>}, {transform_indices = @transform_8, window_bounds = array<i64: 1, 8, 256>}]} {
    %c0 = arith.constant 0 : index
    %c0_0 = arith.constant 0 : index
    %c0_1 = arith.constant 0 : index
    %0 = vector.load %arg2[%c0, %c0_0, %c0_1] : memref<1x4x256xf32, #tpu.memory_space<vmem>>, vector<1x4x256xf32>
    %1 = vector.shape_cast %0 : vector<1x4x256xf32> to vector<4x256xf32>
    %c0_2 = arith.constant 0 : index
    %c0_3 = arith.constant 0 : index
    %2 = vector.load %arg3[%c0_2, %c0_3] : memref<4x1xf32, #tpu.memory_space<vmem>>, vector<4x1xf32>
    %3 = vector.broadcast %2 : vector<4x1xf32> to vector<4x256xf32>
    %4 = arith.mulf %1, %3 : vector<4x256xf32>
    %c0_4 = arith.constant 0 : index
    %c0_5 = arith.constant 0 : index
    %5 = vector.load %arg4[%c0_4, %c0_5] : memref<4x1xf32, #tpu.memory_space<vmem>>, vector<4x1xf32>
    %6 = vector.broadcast %5 : vector<4x1xf32> to vector<4x256xf32>
    %7 = arith.addf %4, %6 : vector<4x256xf32>
    %cst = arith.constant 0.000000e+00 : f32
    %8 = vector.broadcast %cst : f32 to vector<4x256xf32>
    %9 = arith.cmpf ogt, %7, %8 : vector<4x256xf32>
    %10 = arith.extui %9 : vector<4x256xi1> to vector<4x256xi32>
    %11 = arith.sitofp %10 : vector<4x256xi32> to vector<4x256xf32>
    %12 = arith.truncf %11 : vector<4x256xf32> to vector<4x256xbf16>
    %c0_6 = arith.constant 0 : index
    %c0_7 = arith.constant 0 : index
    %13 = vector.load %arg5[%c0_6, %c0_7] : memref<8x4xbf16, #tpu.memory_space<vmem>>, vector<8x4xbf16>
    %cst_8 = arith.constant dense<0.000000e+00> : vector<8x256xf32>
    %14 = tpu.matmul %13, %12, %cst_8 {dimension_numbers = #tpu.dot_dimension_numbers<[1], [0], [0], [1], [0, 0, 1, 1], [], []>} : vector<8x4xbf16>, vector<4x256xbf16>, vector<8x256xf32> -> vector<8x256xf32>
    %c0_9 = arith.constant 0 : index
    %15 = memref.load %arg8[%c0_9] : memref<3xf32, #tpu.memory_space<smem>>
    %c1 = arith.constant 1 : index
    %16 = memref.load %arg8[%c1] : memref<3xf32, #tpu.memory_space<smem>>
    %c2 = arith.constant 2 : index
    %17 = memref.load %arg8[%c2] : memref<3xf32, #tpu.memory_space<smem>>
    %c0_10 = arith.constant 0 : index
    %c0_11 = arith.constant 0 : index
    %c0_12 = arith.constant 0 : index
    %18 = vector.load %arg7[%c0_10, %c0_11, %c0_12] : memref<1x8x256xf32, #tpu.memory_space<vmem>>, vector<1x8x256xf32>
    %19 = vector.shape_cast %18 : vector<1x8x256xf32> to vector<8x256xf32>
    %20 = vector.broadcast %16 : f32 to vector<8x256xf32>
    %21 = arith.mulf %19, %20 : vector<8x256xf32>
    %cst_13 = arith.constant 1.000000e+00 : f32
    %22 = vector.broadcast %cst_13 : f32 to vector<8x256xf32>
    %23 = arith.subf %21, %22 : vector<8x256xf32>
    %cst_14 = arith.constant 0.000000e+00 : f32
    %24 = vector.broadcast %cst_14 : f32 to vector<8x256xf32>
    %25 = arith.cmpf ogt, %23, %24 : vector<8x256xf32>
    %cst_15 = arith.constant 0.000000e+00 : f32
    %26 = vector.broadcast %15 : f32 to vector<8x256xf32>
    %27 = vector.broadcast %cst_15 : f32 to vector<8x256xf32>
    %28 = arith.select %25, %26, %27 : vector<8x256xi1>, vector<8x256xf32>
    %29 = vector.broadcast %17 : f32 to vector<8x256xf32>
    %30 = arith.mulf %29, %19 : vector<8x256xf32>
    %31 = arith.addf %30, %14 : vector<8x256xf32>
    %32 = arith.subf %31, %28 : vector<8x256xf32>
    %c0_16 = arith.constant 0 : index
    %c0_17 = arith.constant 0 : index
    %c0_18 = arith.constant 0 : index
    %33 = vector.load %arg10[%c0_16, %c0_17, %c0_18] : memref<1x8x256xf32, #tpu.memory_space<vmem>>, vector<1x8x256xf32>
    %34 = vector.shape_cast %33 : vector<1x8x256xf32> to vector<8x256xf32>
    %35 = vector.shape_cast %32 : vector<8x256xf32> to vector<1x8x256xf32>
    tpu.vector_store %arg10[%c0_16, %c0_17, %c0_18], %35 {strides = array<i32>} : memref<1x8x256xf32, #tpu.memory_space<vmem>>, vector<1x8x256xf32>,
    %c0_19 = arith.constant 0 : index
    %c0_20 = arith.constant 0 : index
    %36 = vector.load %arg6[%c0_19, %c0_20] : memref<256x64xf32, #tpu.memory_space<vmem>>, vector<256x64xf32>
    %cst_21 = arith.constant dense<0.000000e+00> : vector<8x64xf32>
    %37 = tpu.matmul %23, %36, %cst_21 {dimension_numbers = #tpu.dot_dimension_numbers<[1], [0], [0], [1], [0, 0, 1, 1], [], []>} : vector<8x256xf32>, vector<256x64xf32>, vector<8x64xf32> -> vector<8x64xf32>
    %c0_22 = arith.constant 0 : index
    %c0_23 = arith.constant 0 : index
    %c0_24 = arith.constant 0 : index
    %38 = vector.load %arg9[%c0_22, %c0_23, %c0_24] : memref<1x8x64xf32, #tpu.memory_space<vmem>>, vector<1x8x64xf32>
    %39 = vector.shape_cast %38 : vector<1x8x64xf32> to vector<8x64xf32>
    %40 = vector.shape_cast %37 : vector<8x64xf32> to vector<1x8x64xf32>
    tpu.vector_store %arg9[%c0_22, %c0_23, %c0_24], %40 {strides = array<i32>} : memref<1x8x64xf32, #tpu.memory_space<vmem>>, vector<1x8x64xf32>,
    return
  }
  func.func @transform_0(%arg0: i32, %arg1: i32) -> (i32, i32, i32) {
    %c0_i32 = arith.constant 0 : i32
    %c0_i32_0 = arith.constant 0 : i32
    return %arg0, %c0_i32, %arg1 : i32, i32, i32
  }
  func.func @transform_1(%arg0: i32, %arg1: i32) -> (i32, i32) {
    %c0_i32 = arith.constant 0 : i32
    %c0_i32_0 = arith.constant 0 : i32
    %c0_i32_1 = arith.constant 0 : i32
    return %c0_i32, %c0_i32_0 : i32, i32
  }
  func.func @transform_2(%arg0: i32, %arg1: i32) -> (i32, i32) {
    %c0_i32 = arith.constant 0 : i32
    %c0_i32_0 = arith.constant 0 : i32
    %c0_i32_1 = arith.constant 0 : i32
    return %c0_i32, %c0_i32_0 : i32, i32
  }
  func.func @transform_3(%arg0: i32, %arg1: i32) -> (i32, i32) {
    %c0_i32 = arith.constant 0 : i32
    %c0_i32_0 = arith.constant 0 : i32
    %c0_i32_1 = arith.constant 0 : i32
    return %c0_i32, %c0_i32_0 : i32, i32
  }
  func.func @transform_4(%arg0: i32, %arg1: i32) -> (i32, i32) {
    %c0_i32 = arith.constant 0 : i32
    %c0_i32_0 = arith.constant 0 : i32
    %c0_i32_1 = arith.constant 0 : i32
    return %c0_i32, %c0_i32_0 : i32, i32
  }
  func.func @transform_5(%arg0: i32, %arg1: i32) -> (i32, i32, i32) {
    %c0_i32 = arith.constant 0 : i32
    %c0_i32_0 = arith.constant 0 : i32
    return %arg0, %c0_i32, %arg1 : i32, i32, i32
  }
  func.func @transform_6(%arg0: i32, %arg1: i32) -> i32 {
    %c0_i32 = arith.constant 0 : i32
    %c0_i32_0 = arith.constant 0 : i32
    return %c0_i32 : i32
  }
  func.func @transform_7(%arg0: i32, %arg1: i32) -> (i32, i32, i32) {
    %c0_i32 = arith.constant 0 : i32
    %c0_i32_0 = arith.constant 0 : i32
    return %arg0, %c0_i32, %arg1 : i32, i32, i32
  }
  func.func @transform_8(%arg0: i32, %arg1: i32) -> (i32, i32, i32) {
    %c0_i32 = arith.constant 0 : i32
    %c0_i32_0 = arith.constant 0 : i32
    return %arg0, %c0_i32, %arg1 : i32, i32, i32
  }
}

</mosaic_0001>

<bundles_post_ra>
// kernel: transition_forward.1
= control target key start
LH: loop header
LB: loop body
LE: loop exit
PB: predicated region body
PF: predicated region fallthrough
CT: control target
= control target key end

     0   :  { %14 = vsyncpa [#allocation3], 0  ;;  %s983_s27 = smov 0   ;;  %s985_s28 = smov 0   ;;  %s1176_s0 = inlined_call_operand.vmem [shape: f32[2,4,256], index: 0, kind: input, shape index: {}]   ;;  %s1177_s1 = inlined_call_operand.vmem [shape: f32[4,1], index: 1, kind: input, shape index: {}]   ;;  %s1178_s2 = inlined_call_operand.vmem [shape: f32[4,1], index: 2, kind: input, shape index: {}]   ;;  %s1179_s3 = inlined_call_operand.vmem [shape: bf16[8,4], index: 3, kind: input, shape index: {}]   ;;  %s1180_s4 = inlined_call_operand.vmem [shape: f32[256,64], index: 4, kind: input, shape index: {}]   ;;  %s1181_s5 = inlined_call_operand.vmem [shape: f32[2,8,256], index: 5, kind: input, shape index: {}, may-alias: {5,8}]   ;;  %s1182_s6 = inlined_call_operand.vmem [shape: f32[3], index: 6, kind: input, shape index: {}]   ;;  %s1183_s7 = inlined_call_operand.vmem [shape: f32[2,8,64], index: 7, kind: output, shape index: {0}]   ;;  %s1184_s8 = inlined_call_operand.vmem [shape: f32[2,8,256], index: 8, kind: output, shape index: {1}, may-alias: {5,8}]  }
   0x1   :  { %s987_s29 = smov 0  }
   0x2 LB: > { %s791_s30 = sadd.s32 4294967295, %s932_s29   ;;  %s32_s9 = sadd.s32 1, %s928_s28  ;;  %s932_s29 = sphi %s987_s29, %s20_s29   ;;  %s928_s28 = sphi %s985_s28, %s1188_s28   ;;  %s924_s27 = sphi %s983_s27, %s1187_s27  }
   0x3   : > { %p34_p0 = scmp.ge.s32.totalorder %s32_s9, 2  ;;  %p793_p1 = scmp.ge.s32.totalorder %s932_s29, 1 }
   0x4   : > { %p254_p2 = scmp.lt.s32.totalorder %s932_s29, 3  ;;  %p1008_p4 = scmp.eq.s32.totalorder %s791_s30, 0 }
   0x5   : > { %s1190_s9 = smov (%p34_p0, %s32_s9), 0  ;;  %s279_s14 = sshll.u32 %s1182_s6, 4  ;;  %s280_s14 = int_to_ptr.vmem [resolvable:$true] %s279_s14 }
   0x6   : > { %p1004_p3 = pnand %p793_p1, %p254_p2  ;;  %s891_s15 = scalar_lea.vmem %s280_s14, 16 }
   0x7   : > { %p892_p7 = scmp.ne.s32.totalorder %s280_s14, %s891_s15  ;;  %p899_p11 = scmp.lt.s32.totalorder %s280_s14, %s280_s14 }
   0x8   : > { %p856_p5 = pneg %p1004_p3  ;;  %p900_p12 = scmp.lt.s32.totalorder %s891_s15, %s891_s15 }
   0xa   : > { %p857_p6 = pnand %p1008_p4, %p856_p5  ;;  %p901_p13 = por %p900_p12, %p899_p11 }
   0xc   : > { %p893_p8 = pneg %p857_p6 }
   0xe   : > { %p894_p9 = pnand %p893_p8, %p892_p7 }
  0x10   : > { %p895_p10 = pneg %p894_p9 }
  0x12   : > { %p902_p0 = pnand %p901_p13, %p895_p10 }
  0x14   : > { %905 = shalt.err (!%p902_p0)
}
  0x15   : > { %s934_s16 = smov [#allocation2]   ;;  %318 = sbr.rel (%p1004_p3) target bundleno = 373 (0x175), region = 48 }
  0x16   : > { %859 = dma.vmem_to_smem (!%p857_p6), %s280_s14, 16, %s934_s16, [#allocation3]  }
  0x1a   : > { %919 = dma.done.wait (%p1008_p4), [#allocation3], 16  }
  0x1b   : > { %921 = vsyncadd (%p1008_p4), [#allocation3], 4294967280 }
  0x1c   : > { %324 = sfence }
  0x1d   : > { %v416_v0 = vld [vmem:[%s1177_s1] sm:$0xf]  ;;  %v560_v1 = vld [vmem:[%s1180_s4 + $0xf8] sm:$0xff]  ;;  %v935_v2 = vmov 0   ;;  %v559_v4 = vld [vmem:[%s1180_s4 + $0xf0] sm:$0xff]  ;;  %p378_p1 = scmp.lt.s32.totalorder %s924_s27, 1  ;;  %v424_v44 = vlaneseq }
  0x1e   : > { %890 = vset.pattern.permute.xlu0 %v935_v2  ;;  %817 = vmatprep.subr.mxu1 %v560_v1  ;;  %v544_v3 = vld [vmem:[%s1180_s4 + $0x78] sm:$0xff]  ;;  %v543_v5 = vld [vmem:[%s1180_s4 + $0x70] sm:$0xff]  ;;  %v558_v6 = vld [vmem:[%s1180_s4 + $0xe8] sm:$0xff]  ;;  %s1053_s17 = sld [smem:[#allocation2 + $0x1]]  ;;  %v936_v42 = vmov 839922192  }
  0x1f   : > { %419 = vperm.xlu0 %890, %v416_v0   ;;  %818 = vmatpush3.msra.mxu1 %v544_v3  ;;  %v430_v7 = vld [vmem:[%s1178_s2] sm:$0xf]  ;;  %v542_v8 = vld [vmem:[%s1180_s4 + $0x68] sm:$0xff]  ;;  %v556_v11 = vld [vmem:[%s1180_s4 + $0xd8] sm:$0xff]  ;;  %s1192_s27 = smov (!%p378_p1, %s924_s27), 1  ;;  %v422_v43 = vunpack.c.l.s4 %v936_v42  ;;  %v425_v46 = vshrl.u32 %v424_v44, 7 }
  0x20   : > { %819 = vmatprep.subr.mxu1 %v559_v4  ;;  %496 = vmatprep.mubr.bf16.mxu0 %v935_v2  ;;  %v557_v9 = vld [vmem:[%s1180_s4 + $0xe0] sm:$0xff]  ;;  %v540_v12 = vld [vmem:[%s1180_s4 + $0x58] sm:$0xff]  ;;  %v555_v13 = vld [vmem:[%s1180_s4 + $0xd0] sm:$0xff]  ;;  %s815_s26 = sshll.u32 %s1192_s27, 4  ;;  %s814_s22 = sshll.u32 %s1192_s27, 3  ;;  %v937_v55 = vmov 0.0  }
  0x21   : > { %820 = vmatpush3.msra.mxu1 %v543_v5  ;;  %v541_v10 = vld [vmem:[%s1180_s4 + $0x60] sm:$0xff]  ;;  %v539_v14 = vld [vmem:[%s1180_s4 + $0x50] sm:$0xff]  ;;  %s1079_s13 = scalar_lea.vmem %s1181_s5, %s815_s26  ;;  %v554_v15 = vld [vmem:[%s1180_s4 + $0xc8] sm:$0xff]  ;;  %v423_v45 = vunpack.c.0.s8 %v422_v43  ;;  %s385_s24 = scalar_lea.vmem %s1176_s0, %s814_s22  ;;  %vm457_vm1 = vcmask 1041408   ;;  %vm453_vm2 = vcmask 31744   ;;  %vm631_vm3 = vcmask 523264  }
  0x22   : > { %821 = vmatprep.subr.mxu1 %v558_v6  ;;  %v1085_v16 = vld [vmem:[%s1079_s13 + $0x8] sm:$0xff]  ;;  %v553_v20 = vld [vmem:[%s1180_s4 + $0xc0] sm:$0xff]  ;;  %v552_v23 = vld [vmem:[%s1180_s4 + $0xb8] sm:$0xff]  ;;  %s403_s12 = scalar_lea.vmem %s1183_s7, %s814_s22  ;;  %s809_s14 = sld [smem:[#allocation2 + $0x2]] }
  0x23   : > { %433 = vperm.xlu0 %890, %v430_v7   ;;  %822 = vmatpush3.msra.mxu1 %v542_v8  ;;  %v538_v18 = vld [vmem:[%s1180_s4 + $0x48] sm:$0xff]  ;;  %v537_v21 = vld [vmem:[%s1180_s4 + $0x40] sm:$0xff]  ;;  %v536_v24 = vld [vmem:[%s1180_s4 + $0x38] sm:$0xff]  ;;  %v426_v47 = vsub.s32 %v423_v45, %v425_v46  ;;  %s505_s15 = sld [smem:[#allocation2]]  ;;  %s412_s18 = scalar_lea.vmem %s1184_s8, %s815_s26 }
  0x24   : > { %823 = vmatprep.subr.mxu1 %v557_v9  ;;  %v510_v17 = vstv %s1053_s17  ;;  %v551_v25 = vld [vmem:[%s1180_s4 + $0xb0] sm:$0xff]  ;;  %v550_v27 = vld [vmem:[%s1180_s4 + $0xa8] sm:$0xff]  ;;  %v549_v29 = vld [vmem:[%s1180_s4 + $0xa0] sm:$0xff] }
  0x25   : > { %824 = vmatpush3.msra.mxu1 %v541_v10  ;;  %v512_v19 = vmul.f32 %v510_v17, %v1085_v16  ;;  %v535_v26 = vld [vmem:[%s1180_s4 + $0x30] sm:$0xff]  ;;  %v534_v28 = vld [vmem:[%s1180_s4 + $0x28] sm:$0xff]  ;;  %v533_v30 = vld [vmem:[%s1180_s4 + $0x20] sm:$0xff] }
  0x26   : > { %825 = vmatprep.subr.mxu1 %v556_v11  ;;  %v548_v31 = vld [vmem:[%s1180_s4 + $0x98] sm:$0xff]  ;;  %v508_v32 = vld [vmem:[%s1079_s13] sm:$0xff]  ;;  %v547_v34 = vld [vmem:[%s1180_s4 + $0x90] sm:$0xff] }
  0x27   : > { %826 = vmatpush3.msra.mxu1 %v540_v12  ;;  %v1098_v22 = vadd.f32 -1.0, %v512_v19  ;;  %v532_v33 = vld [vmem:[%s1180_s4 + $0x18] sm:$0xff]  ;;  %v531_v35 = vld [vmem:[%s1180_s4 + $0x10] sm:$0xff]  ;;  %v511_v36 = vmul.f32 %v510_v17, %v508_v32  ;;  %v546_v37 = vld [vmem:[%s1180_s4 + $0x88] sm:$0xff] }
  0x28   : > { %827 = vmatprep.subr.mxu1 %v555_v13  ;;  %v530_v38 = vld [vmem:[%s1180_s4 + $0x8] sm:$0xff]  ;;  %v545_v39 = vld [vmem:[%s1180_s4 + $0x80] sm:$0xff]  ;;  %v520_v1 = vstv %s809_s14 }
  0x29   : > { %828 = vmatpush3.msra.mxu1 %v539_v14  ;;  %625 = vmatprep.mubr.f32.mxu1 %v1098_v22  ;;  %v529_v40 = vld [vmem:[%s1180_s4] sm:$0xff]  ;;  %v810_v41 = vadd.f32 -1.0, %v511_v36  ;;  %v517_v2 = vstv %s505_s15  ;;  %v521_v3 = vmul.f32 %v520_v1, %v508_v32  ;;  %vm516_vm5 = vcmp.gt.f32.partialorder %v1098_v22, 0.0 }
  0x2a   : > { %829 = vmatprep.subr.mxu1 %v554_v15  ;;  %v415_v50 = vld [vmem:[%s385_s24] sm:$0xff]  ;;  %v522_v4 = vmul.f32 %v520_v1, %v1085_v16  ;;  %v519_v9 = vsel %vm516_vm5, %v517_v2, 0.0 }
  0x2b   : > { %830 = vmatpush3.msra.mxu1 %v538_v18  ;;  %v452_v61 = vld [vmem:[%s1179_s3] sm:$0xf]  ;;  %vm515_vm4 = vcmp.gt.f32.partialorder %v810_v41, 0.0 }
  0x2c   : > { %831 = vmatprep.subr.mxu1 %v553_v20  ;;  %v518_v6 = vsel %vm515_vm4, %v517_v2, 0.0 }
  0x2d   : > { %832 = vmatpush3.msra.mxu1 %v537_v21 }
  0x2e   : > { %833 = vmatprep.subr.mxu1 %v552_v23 }
  0x2f   : > { %834 = vmatpush3.msra.mxu1 %v536_v24 }
  0x30   : > { %835 = vmatprep.subr.mxu1 %v551_v25 }
  0x31   : > { %836 = vmatpush3.msra.mxu1 %v535_v26 }
  0x32   : > { %837 = vmatprep.subr.mxu1 %v550_v27 }
  0x33   : > { %838 = vmatpush3.msra.mxu1 %v534_v28 }
  0x34   : > { %839 = vmatprep.subr.mxu1 %v549_v29 }
  0x35   : > { %840 = vmatpush3.msra.mxu1 %v533_v30 }
  0x36   : > { %841 = vmatprep.subr.mxu1 %v548_v31 }
  0x37   : > { %842 = vmatpush3.msra.mxu1 %v532_v33 }
  0x38   : > { %843 = vmatprep.subr.mxu1 %v547_v34 }
  0x39   : > { %844 = vmatpush3.msra.mxu1 %v531_v35 }
  0x3a   : > { %845 = vmatprep.subr.mxu1 %v546_v37 }
  0x3b   : > { %846 = vmatpush3.msra.mxu1 %v530_v38 }
  0x3c   : > { %847 = vmatprep.subr.mxu1 %v545_v39 }
  0x3d   : > { %848 = vmatpush3.msra.mxu1 %v529_v40 }
  0x3e   : > { %626 = vmatmul.mubr.f32.vlgmr.msra.gmra.mxu1 %v810_v41 }
  0x9a   : > { %v420_v48 = vpop.permute.xlu0 %419 }
  0x9b   : > { %v427_v49 = vrot.slane %v420_v48, %v426_v47 }
  0x9d   : > { %v429_v52 = vmul.f32 %v427_v49, %v415_v50 }
  0x9e   : > { %v434_v51 = vpop.permute.xlu0 %433 }
  0x9f   : > { %v441_v53 = vrot.slane %v434_v51, %v426_v47 }
  0xa1   : > { %v443_v54 = vadd.f32 %v441_v53, %v429_v52 }
  0xa3   : > { %vm444_vm0 = vcmp.gt.f32.partialorder %v443_v54, 0.0 }
  0xa4   : > { %v805_v56 = vsel %vm444_vm0, 1.0, %v937_v55 }
  0xa5   : > { %v448_v57 = vcombine.high %v805_v56, %v805_v56  ;;  %v450_v58 = vpack.c.bf16 %v805_v56, %v805_v56 }
  0xa7   : > { %v451_v59 = vpack.c.bf16 %v448_v57, %v448_v57  ;;  %v459_v60 = vsel %vm457_vm1, %v450_v58, 0 }
  0xa9   : > { %806 = vmatprep.subr.msk.bf16.mxu0 %vm457_vm1, %v451_v59 }
  0xaa   : > { %479 = vmatpush1.bf16.msra.mxu0 %v459_v60 }
  0xad   : > { %807 = vmatmul.mubr.msk.bf16.vlgmr.msra.gmra.mxu0 %vm453_vm2, %v452_v61 }
  0xfe   : > { %v849_v62 = vpop.f32.mrf.mxu1 }
 0x100   : > { %v850_v63 = vpop.f32.mrf.mxu1 }
 0x101   : > { %v851_v0 = vadd.f32 %v850_v63, %v849_v62 }
 0x103   : > { %632 = vst.msk [vmem:[%s403_s12] sm:$0xff] %vm631_vm3, %v851_v0 }
 0x16d   : > { %v498_v5 = vpop.f32.mrf.mxu0 }
 0x16e   : > { %v523_v7 = vadd.f32 %v521_v3, %v498_v5 }
 0x16f   : > { %v500_v8 = vpop.f32.mrf.mxu0 }
 0x170   : > { %v525_v10 = vsub.f32 %v523_v7, %v518_v6  ;;  %v524_v11 = vadd.f32 %v522_v4, %v500_v8 }
 0x171   : > { %v502_v12 = vpop.f32.mrf.mxu0 }
 0x172   : > { %527 = vst [vmem:[%s412_s18] sm:$0xff] %v525_v10  ;;  %v526_v13 = vsub.f32 %v524_v11, %v519_v9 }
 0x173   : > { %v503_v14 = vpop.f32.mrf.mxu0 }
 0x174   : > { %528 = vst [vmem:[%s412_s18 + $0x8] sm:$0xff] %v526_v13 }
 0x175 PF: > { %s20_s29 = sadd.s32 1, %s932_s29   ;;  %s1187_s27 = smov %s928_s28 }
 0x176   : > { %p17_p2 = scmp.ge.s32.totalorder %s20_s29, 4   ;;  %s1188_s28 = smov %s1190_s9 }
 0x178   :  { %19 = sbr.rel (!%p17_p2) target bundleno = 2 (0x2), region = 98 }
 0x17d   :  { %683 = vsyncpa [#allocation3], 1 }
 0x17e   :  { %685 = vsyncpa [#allocation3 + $0x1], 1 }

</bundles_post_ra>
